<compile_context>
chip_gen: v7x
topology: tpu7x:2x2x1
jax: 0.10.0
libtpu: 0.0.40
codegen_flags: <defaults>
</compile_context>

<pallas_src>
import functools

import jax
import jax.numpy as jnp
from jax.experimental import pallas as pl
from jax.experimental.pallas import tpu as pltpu

LANES = 128
ROW_TILE = 4096          # rows per streaming grid step (2 MiB f32 per input block)
ACC_ROWS = 256           # fixed-size resident accumulator block (128 KiB f32)
NUM_SHARDS = 2           # leading "parallel" axis -> both TCs on v7x; harmless on 1-TC chips
MAX_SINGLE_ROWS = ROW_TILE


def _mae_single_kernel(x_ref, y_ref, o_ref, *, inv_n):
    # One-shot: whole (rows, 128) slab is resident in VMEM.
    diff = jnp.abs(x_ref[...].astype(jnp.float32) - y_ref[...].astype(jnp.float32))
    o_ref[...] = (jnp.sum(diff, keepdims=True) * jnp.float32(inv_n)).astype(o_ref.dtype)


def _mae_stream_kernel(x_ref, y_ref, o_ref, *, total_rows, needs_mask):
    """Streaming reduction step.

    o_ref is the (ACC_ROWS, LANES) per-shard accumulator block, resident in
    VMEM across the inner ("arbitrary") grid axis.  The (ROW_TILE, LANES)
    |x - y| tile is folded into it chunk-by-chunk with pure VPU adds; the
    partial/duplicated last tile is zeroed via a row-index mask.
    """
    i = pl.program_id(1)

    @pl.when(i == 0)
    def _():
        o_ref[...] = jnp.zeros_like(o_ref)

    # First row of the *logical* tile this (shard, step) is responsible for.
    base = (pl.program_id(0) * pl.num_programs(1) + i) * ROW_TILE

    # TODO(synk): sweep pipeline_mode=pl.Buffered(3) on the input specs if a
    # trace ever shows exposed DMA at step boundaries.
    for r in range(0, ROW_TILE, ACC_ROWS):
        d = jnp.abs(x_ref[r:r + ACC_ROWS, :].astype(jnp.float32)
                    - y_ref[r:r + ACC_ROWS, :].astype(jnp.float32))
        if needs_mask:
            rid = jax.lax.broadcasted_iota(jnp.int32, (ACC_ROWS, LANES), 0) + (base + r)
            d = jnp.where(rid < total_rows, d, 0.0)
        o_ref[...] += d


def _as_lane_slab(x, y):
    """Flatten to a lane-dense (rows, LANES) slab.

    No dtype cast (done in-kernel) and no padding unless the element count is
    not already a multiple of 128; padding zeros contribute 0 to the sum.
    """
    n = x.size
    rows = pl.cdiv(n, LANES)
    pad = rows * LANES - n
    xf = jnp.ravel(x)
    yf = jnp.ravel(y)
    if pad:
        # TODO(synk): for ragged n, handle the <128-element tail outside the
        # kernel to avoid this whole-array pad copy (rare for NCHW tensors).
        xf = jnp.pad(xf, (0, pad))
        yf = jnp.pad(yf, (0, pad))
    return xf.reshape(rows, LANES), yf.reshape(rows, LANES), rows


def mae_loss(x: jax.Array, y: jax.Array) -> jax.Array:
    """Pallas TPU implementation of torch.mean(torch.abs(x - y))."""
    assert x.shape == y.shape, "x and y must have the same shape"
    n = x.size
    inv_n = 1.0 / float(n)

    x2, y2, rows = _as_lane_slab(x, y)

    if rows <= MAX_SINGLE_ROWS:
        # Single grid step: no accumulator, no init/finalize branches.
        out = pl.pallas_call(
            functools.partial(_mae_single_kernel, inv_n=inv_n),
            out_shape=jax.ShapeDtypeStruct((1, 1), jnp.float32),
            grid_spec=pltpu.PrefetchScalarGridSpec(
                num_scalar_prefetch=0,
                grid=(1,),
                in_specs=[
                    pl.BlockSpec((rows, LANES), lambda i: (0, 0)),
                    pl.BlockSpec((rows, LANES), lambda i: (0, 0)),
                ],
                out_specs=pl.BlockSpec((1, 1), lambda i: (0, 0)),
            ),
        )(x2, y2)
        total = out[0, 0]
    else:
        # Streaming reduction: grid = (shards, steps-per-shard), masked tail.
        steps = pl.cdiv(rows, ROW_TILE)
        steps_per_shard = pl.cdiv(steps, NUM_SHARDS)
        last_block = steps - 1
        # Mask whenever the last tile is partial or a shard owns a logical
        # block past the end (odd step count -> clamped duplicate block).
        needs_mask = (rows % ROW_TILE != 0) or (NUM_SHARDS * steps_per_shard != steps)

        def in_map(c, i):
            # Clamp so a trailing (fully masked) logical block never issues an
            # out-of-bounds DMA; its contribution is zeroed in-kernel.
            return (jnp.minimum(c * steps_per_shard + i, last_block), 0)

        out = pl.pallas_call(
            functools.partial(_mae_stream_kernel, total_rows=rows, needs_mask=needs_mask),
            out_shape=jax.ShapeDtypeStruct((NUM_SHARDS * ACC_ROWS, LANES), jnp.float32),
            grid_spec=pltpu.PrefetchScalarGridSpec(
                num_scalar_prefetch=0,
                grid=(NUM_SHARDS, steps_per_shard),
                in_specs=[
                    pl.BlockSpec((ROW_TILE, LANES), in_map),
                    pl.BlockSpec((ROW_TILE, LANES), in_map),
                ],
                out_specs=pl.BlockSpec((ACC_ROWS, LANES), lambda c, i: (c, 0)),
            ),
            compiler_params=pltpu.CompilerParams(
                dimension_semantics=("parallel", "arbitrary"),
            ),
        )(x2, y2)
        # Tiny final reduce over the per-shard, per-lane partial sums.
        total = jnp.sum(out, dtype=jnp.float32) * jnp.float32(inv_n)

    # Match PyTorch's dtype semantics (mean returns the input floating dtype).
    if jnp.issubdtype(x.dtype, jnp.floating):
        total = total.astype(x.dtype)
    return total


if __name__ == "__main__":
    key = jax.random.PRNGKey(0)
    kx, ky = jax.random.split(key)

    # Primary check: the module's expected NCHW input shape (single-step path).
    shape = (2, 4, 16, 16)
    x = jax.random.normal(kx, shape, dtype=jnp.float32)
    y = jax.random.normal(ky, shape, dtype=jnp.float32)
    loss = jax.block_until_ready(mae_loss(x, y))
    ref = jnp.mean(jnp.abs(x - y))
    assert jnp.allclose(loss, ref, rtol=1e-6, atol=1e-6), (loss, ref)

    # Ragged element count (forces the pad-to-128 fallback, single-step path).
    shape_b = (2, 3, 7, 11)  # 462 elems, not a multiple of 128
    xb = jax.random.normal(kx, shape_b, dtype=jnp.float32)
    yb = jax.random.normal(ky, shape_b, dtype=jnp.float32)
    loss_b = jax.block_until_ready(mae_loss(xb, yb))
    ref_b = jnp.mean(jnp.abs(xb - yb))
    assert jnp.allclose(loss_b, ref_b, rtol=1e-6, atol=1e-6), (loss_b, ref_b)

    # Streaming path with a partial (masked) last tile: 5625 rows -> 2 tiles.
    shape_c = (2, 4, 300, 300)  # 720000 elems = 5625 rows
    xc = jax.random.normal(kx, shape_c, dtype=jnp.float32)
    yc = jax.random.normal(ky, shape_c, dtype=jnp.float32)
    loss_c = jax.block_until_ready(mae_loss(xc, yc))
    ref_c = jnp.mean(jnp.abs(xc - yc))
    assert jnp.allclose(loss_c, ref_c, rtol=1e-4, atol=1e-6), (loss_c, ref_c)

    # Streaming path with an odd tile count: exercises the clamped index_map
    # and the fully-masked duplicate block on the second shard.
    shape_d = (2, 4, 400, 400)  # 1_280_000 elems = 10000 rows -> 3 tiles
    xd = jax.random.normal(kx, shape_d, dtype=jnp.float32)
    yd = jax.random.normal(ky, shape_d, dtype=jnp.float32)
    loss_d = jax.block_until_ready(mae_loss(xd, yd))
    ref_d = jnp.mean(jnp.abs(xd - yd))
    assert jnp.allclose(loss_d, ref_d, rtol=1e-4, atol=1e-6), (loss_d, ref_d)

    print("KERNEL_OK")
</pallas_src>

<mosaic_0001>
module attributes {stable_mosaic.version = 11 : i64} {
  func.func @_mae_single_kernel(%arg0: i32, %arg1: memref<16x128xf32, #tpu.memory_space<vmem>>, %arg2: memref<16x128xf32, #tpu.memory_space<vmem>>, %arg3: memref<1x1xf32, #tpu.memory_space<vmem>>) attributes {dimension_semantics = [#tpu.dimension_semantics<arbitrary>], iteration_bounds = array<i64: 1>, scalar_prefetch = 0 : i64, scratch_operands = 0 : i64, tpu.core_type = #tpu.core_type<tc>, window_params = [{pipeline_mode = #tpu.pipeline_mode<synchronous>, transform_indices = @transform_0, window_bounds = array<i64: 16, 128>}, {pipeline_mode = #tpu.pipeline_mode<synchronous>, transform_indices = @transform_1, window_bounds = array<i64: 16, 128>}, {pipeline_mode = #tpu.pipeline_mode<synchronous>, transform_indices = @transform_2, window_bounds = array<i64: 1, 1>}]} {
    %c0 = arith.constant 0 : index
    %c0_0 = arith.constant 0 : index
    %0 = vector.load %arg1[%c0, %c0_0] : memref<16x128xf32, #tpu.memory_space<vmem>>, vector<16x128xf32>
    %c0_1 = arith.constant 0 : index
    %c0_2 = arith.constant 0 : index
    %1 = vector.load %arg2[%c0_1, %c0_2] : memref<16x128xf32, #tpu.memory_space<vmem>>, vector<16x128xf32>
    %2 = arith.subf %0, %1 : vector<16x128xf32>
    %3 = math.absf %2 : vector<16x128xf32>
    %4 = vector.shape_cast %3 : vector<16x128xf32> to vector<1x16x128xf32>
    %cst = arith.constant dense<0.000000e+00> : vector<1xf32>
    %5 = vector.multi_reduction <add>, %4, %cst [1, 2] : vector<1x16x128xf32> to vector<1xf32>
    %6 = vector.shape_cast %5 : vector<1xf32> to vector<1x1x1xf32>
    %7 = vector.extract %6[0, 0, 0] : f32 from vector<1x1x1xf32>
    %8 = vector.broadcast %7 : f32 to vector<1x1xf32>
    %cst_3 = arith.constant 4.8828125E-4 : f32
    %9 = vector.broadcast %cst_3 : f32 to vector<1x1xf32>
    %10 = arith.mulf %8, %9 : vector<1x1xf32>
    %c0_4 = arith.constant 0 : index
    %c0_5 = arith.constant 0 : index
    %11 = vector.load %arg3[%c0_4, %c0_5] : memref<1x1xf32, #tpu.memory_space<vmem>>, vector<1x1xf32>
    tpu.vector_store %arg3[%c0_4, %c0_5], %10 {strides = array<i32>} : memref<1x1xf32, #tpu.memory_space<vmem>>, vector<1x1xf32>,
    return
  }
  func.func @transform_0(%arg0: i32) -> (i32, i32) {
    %c0_i32 = arith.constant 0 : i32
    %c0_i32_0 = arith.constant 0 : i32
    %c0_i32_1 = arith.constant 0 : i32
    return %c0_i32, %c0_i32_0 : i32, i32
  }
  func.func @transform_1(%arg0: i32) -> (i32, i32) {
    %c0_i32 = arith.constant 0 : i32
    %c0_i32_0 = arith.constant 0 : i32
    %c0_i32_1 = arith.constant 0 : i32
    return %c0_i32, %c0_i32_0 : i32, i32
  }
  func.func @transform_2(%arg0: i32) -> (i32, i32) {
    %c0_i32 = arith.constant 0 : i32
    %c0_i32_0 = arith.constant 0 : i32
    %c0_i32_1 = arith.constant 0 : i32
    return %c0_i32, %c0_i32_0 : i32, i32
  }
}

</mosaic_0001>

<bundles_post_ra>
// kernel: tpu_custom_call.1
= control target key start
LH: loop header
LB: loop body
LE: loop exit
PB: predicated region body
PF: predicated region fallthrough
CT: control target
= control target key end

     0   :  { %7 = vsyncpa [#allocation3], 0  ;;  %s213_s0 = inlined_call_operand.hbm [shape: f32[16,128], index: 0, kind: input, shape index: {}]   ;;  %s214_s1 = inlined_call_operand.hbm [shape: f32[16,128], index: 1, kind: input, shape index: {}]   ;;  %s215_s2 = inlined_call_operand.hbm [shape: f32[1,1], index: 2, kind: output, shape index: {}]  }
   0x1   :  { %8 = vsyncpa [#allocation6], 0 }
   0x2   :  { %9 = vsyncpa [#allocation4], 0  ;;  %s157_s9 = smov [#allocation2]   ;;  %s85_s13 = scalar_lea.hbm %s213_s0, 256 }
   0x3   :  { %s15_s10 = sshll.u32 %s157_s9, 4  ;;  %p86_p0 = scmp.ne.s32.totalorder %s213_s0, %s85_s13  ;;  %s16_s10 = int_to_ptr.vmem [resolvable:$true] %s15_s10 }
   0x4   :  { %p89_p1 = scmp.lt.u32.totalorder %s85_s13, %s213_s0 }
   0x6   :  { %p91_p2 = pnand %p89_p1, %p86_p0 }
   0x8   :  { %94 = shalt.err (!%p91_p2)
}
   0x9   :  { %s95_s18 = scalar_lea.vmem %s16_s10, 256  ;;  %p100_p4 = scmp.lt.s32.totalorder %s16_s10, %s16_s10 }
   0xa   :  { %p96_p3 = scmp.ne.s32.totalorder %s16_s10, %s95_s18  ;;  %p101_p5 = scmp.lt.s32.totalorder %s95_s18, %s95_s18 }
   0xc   :  { %p102_p6 = por %p101_p5, %p100_p4 }
   0xe   :  { %p103_p7 = pnand %p102_p6, %p96_p3 }
  0x10   :  { %106 = shalt.err (!%p103_p7)
}
  0x11   :  { %s158_s19 = smov 128   ;;  %s159_s20 = smov 8  }
  0x12   :  { %21 = dma.hbm_to_vmem [thread:$0]  %s213_s0, 256, %s16_s10, [#allocation3], %s158_s19, %s158_s19, %s159_s20  }
  0x13   :  { %s160_s23 = smov [#allocation5]   ;;  %s107_s27 = scalar_lea.hbm %s214_s1, 256 }
  0x14   :  { %s27_s24 = sshll.u32 %s160_s23, 4  ;;  %p108_p8 = scmp.ne.s32.totalorder %s214_s1, %s107_s27  ;;  %s28_s24 = int_to_ptr.vmem [resolvable:$true] %s27_s24 }
  0x15   :  { %p111_p9 = scmp.lt.u32.totalorder %s107_s27, %s214_s1 }
  0x17   :  { %p113_p10 = pnand %p111_p9, %p108_p8 }
  0x19   :  { %116 = shalt.err (!%p113_p10)
}
  0x1a   :  { %s117_s4 = scalar_lea.vmem %s28_s24, 256  ;;  %p122_p12 = scmp.lt.s32.totalorder %s28_s24, %s28_s24 }
  0x1b   :  { %p118_p11 = scmp.ne.s32.totalorder %s28_s24, %s117_s4  ;;  %p123_p13 = scmp.lt.s32.totalorder %s117_s4, %s117_s4 }
  0x1d   :  { %p124_p0 = por %p123_p13, %p122_p12 }
  0x1f   :  { %p125_p1 = pnand %p124_p0, %p118_p11 }
  0x21   :  { %128 = shalt.err (!%p125_p1)
}
  0x22   :  { %33 = dma.hbm_to_vmem [thread:$0]  %s214_s1, 256, %s28_s24, [#allocation6], %s158_s19, %s158_s19, %s159_s20  }
  0x23   :  { %151 = dma.done.wait [#allocation3], 256  }
  0x24   :  { %152 = vsyncadd [#allocation3], 4294967040 }
  0x25   :  { %153 = dma.done.wait [#allocation6], 256  }
  0x26   :  { %154 = vsyncadd [#allocation6], 4294967040  ;;  %v40_v0 = vld [vmem:[#allocation2] sm:$0xff]  ;;  %v41_v1 = vld [vmem:[#allocation2 + $0x8] sm:$0xff]  ;;  %s161_s1 = smov [#allocation7]   ;;  %vm60_vm0 = vcmask 0  }
  0x27   :  { %v42_v2 = vld [vmem:[#allocation5] sm:$0xff]  ;;  %v43_v3 = vld [vmem:[#allocation5 + $0x8] sm:$0xff]  ;;  %s68_s6 = sshll.u32 %s161_s1, 4  ;;  %s69_s6 = int_to_ptr.vmem [resolvable:$true] %s68_s6 }
  0x28   :  { %v44_v4 = vsub.f32 %v40_v0, %v42_v2  ;;  %v45_v5 = vsub.f32 %v41_v1, %v43_v3  ;;  %s129_s8 = scalar_lea.vmem %s69_s6, 16  ;;  %s133_s9 = scalar_lea.vmem %s69_s6, 32 }
  0x29   :  { %p130_p2 = scmp.ne.s32.totalorder %s69_s6, %s129_s8  ;;  %p134_p3 = scmp.lt.s32.totalorder %s69_s6, %s69_s6 }
  0x2a   :  { %v46_v6 = vand.u32 2147483647, %v44_v4  ;;  %v47_v7 = vand.u32 2147483647, %v45_v5  ;;  %p135_p4 = scmp.lt.s32.totalorder %s133_s9, %s129_s8 }
  0x2c   :  { %v48_v8 = vadd.f32 %v47_v7, %v46_v6  ;;  %p136_p5 = por %p135_p4, %p134_p3 }
  0x2e   :  { %49 = vadd.xlane.f32.xlu0 %v48_v8  ;;  %p137_p6 = pnand %p136_p5, %p130_p2 }
  0xbb   :  { %v50_v9 = vpop.xlane.xlu0 %49 }
  0xbc   :  { %v51_v10 = vrot.slane %v50_v9, 4 }
  0xbe   :  { %v52_v11 = vadd.f32 %v51_v10, %v50_v9 }
  0xc0   :  { %v53_v12 = vrot.slane %v52_v11, 2 }
  0xc2   :  { %v54_v13 = vadd.f32 %v53_v12, %v52_v11 }
  0xc4   :  { %v55_v14 = vrot.slane %v54_v13, 1 }
  0xc6   :  { %v56_v15 = vadd.f32 %v55_v14, %v54_v13 }
  0xc8   :  { %78 = vpush %v56_v15 }
  0xf9   :  { %s79_s7 = spop %78 }
  0xfa   :  { %v58_v16 = vstv %s79_s7 }
  0xfb   :  { %v59_v17 = vmul.f32 0.00048828125, %v58_v16 }
  0xfd   :  { %61 = vst.msk [vmem:[#allocation7] sm:$0x1] %vm60_vm0, %v59_v17 }
  0xfe   :  { %140 = shalt.err (!%p137_p6)
}
  0xff   :  { %s141_s12 = scalar_lea.hbm %s215_s2, 16 }
 0x100   :  { %p142_p7 = scmp.ne.s32.totalorder %s215_s2, %s141_s12  ;;  %p145_p8 = scmp.lt.u32.totalorder %s141_s12, %s215_s2 }
 0x102   :  { %p147_p9 = pnand %p145_p8, %p142_p7 }
 0x104   :  { %150 = shalt.err (!%p147_p9)
}
 0x105   :  { %71 = dma.vmem_to_hbm [thread:$0]  %s69_s6, 16, %s215_s2, [#allocation4]  }
 0x106   :  { %155 = dma.done.wait [#allocation4], 16  }
 0x107   :  { %156 = vsyncadd [#allocation4], 4294967280 }
 0x108   :  { %75 = vsyncpa [#allocation3], 1 }
 0x109   :  { %76 = vsyncpa [#allocation6], 1 }
 0x10a   :  { %77 = vsyncpa [#allocation4], 1 }

</bundles_post_ra>
